<compile_context>
chip_gen: v5e
topology: v5e:2x2
jax: 0.10.0
libtpu: 0.0.40
codegen_flags: <defaults>
</compile_context>

<pallas_src>
import jax
import jax.numpy as jnp
from jax.experimental import pallas as pl
from jax.experimental.pallas import tpu as pltpu

IN_FEATURES = 100


def _round_up(n, m):
    return ((n + m - 1) // m) * m


def projection_head_kernel(x_ref, w1_ref, b1_ref, w2_ref, b2_ref, o_ref):
    # fc1: (tb, 100) @ (100, H4p) -> f32 accumulate; bias add + ReLU stay in f32.
    x = x_ref[...].astype(w1_ref.dtype)           # no-op for f32; bf16 cast for bf16 weights
    h = jnp.dot(x, w1_ref[...], preferred_element_type=jnp.float32)
    h = jnp.maximum(h + b1_ref[...], 0.0)
    # fc2: (tb, H4p) @ (H4p, H) -> f32 accumulate; bias add in f32.  N = H (unpadded):
    # the MXU is half-empty but the kernel is HBM-bound, so fewer output bytes win.
    y = jnp.dot(h.astype(w2_ref.dtype), w2_ref[...], preferred_element_type=jnp.float32)
    o_ref[...] = (y + b2_ref[...]).astype(o_ref.dtype)


def prepare_projection_head_params(w1, b1, w2, b2, *, dtype=None):
    """Pad + transpose PyTorch-layout Linear params ONCE (parameter-load time).

    w1: (4H, 100), b1: (4H,), w2: (H, 4H), b2: (H,)   [PyTorch nn.Linear layout]
    Only the inner 4H dim is zero-padded to a 128-multiple (clean MXU / lane tiles);
    K=100 and the output width H are kept unpadded (they equal the full array dims,
    which BlockSpec accepts, and padding them only adds HBM bytes).
    """
    four_h, in_dim = w1.shape
    H = w2.shape[0]
    h4p = _round_up(four_h, 128)    # padded fc1 width (inner dim only)
    w_dtype = jnp.dtype(dtype) if dtype is not None else w1.dtype

    # Zero padding guarantees padded lanes/rows contribute nothing to the result.
    w1_t = jnp.zeros((in_dim, h4p), w_dtype).at[:, :four_h].set(
        jnp.transpose(w1).astype(w_dtype))
    w2_t = jnp.zeros((h4p, H), w_dtype).at[:four_h, :].set(
        jnp.transpose(w2).astype(w_dtype))
    b1_p = jnp.zeros((1, h4p), jnp.float32).at[:, :four_h].set(b1.astype(jnp.float32))
    b2_p = b2.astype(jnp.float32).reshape(1, H)
    return dict(w1_t=w1_t, b1=b1_p, w2_t=w2_t, b2=b2_p,
                in_dim=in_dim, four_h=four_h, hidden=H)


def projection_head_apply(x, params, *, block_batch=None, out_dtype=None):
    """x: (B, 100). Returns (B, H) in out_dtype (default: x.dtype)."""
    B, in_dim = x.shape
    assert in_dim == params["in_dim"]
    w1_t, w2_t = params["w1_t"], params["w2_t"]
    k_dim, h4p = w1_t.shape
    H = params["hidden"]
    w_dtype = w1_t.dtype
    out_dtype = jnp.dtype(out_dtype) if out_dtype is not None else x.dtype

    # Batch tiling: large tiles (per-step overhead ~0.35us, VMEM footprint is tiny),
    # 16-row multiples for bf16 sublane packing, and >= 2 grid steps when B allows
    # so v7x's two TensorCores both get a share of the "parallel" axis.
    mult = 16 if (w_dtype == jnp.bfloat16 and B >= 16) else 8
    tb = block_batch if block_batch is not None else 2048
    if block_batch is None and B >= 2 * mult:
        tb = min(tb, _round_up(pl.cdiv(B, 2), mult))
    tb = _round_up(max(mult, min(tb, B)), mult)
    grid = (pl.cdiv(B, tb),)   # ragged tail block is masked by Pallas (no B padding)

    x_bytes = jnp.dtype(x.dtype).itemsize
    w_bytes = jnp.dtype(w_dtype).itemsize
    out_bytes = jnp.dtype(out_dtype).itemsize

    cost = pl.CostEstimate(
        flops=2 * B * (in_dim * h4p + h4p * H),
        transcendentals=0,
        bytes_accessed=(B * in_dim * x_bytes + B * H * out_bytes
                        + (k_dim * h4p + h4p * H) * w_bytes + (h4p + H) * 4),
    )

    # VMEM budget from the tile actually chosen: double-buffered x/out tiles,
    # fc1 activation, and the (once-fetched) weights/biases, with headroom.
    # Capped at 32 MiB so it stays comfortable on v7x's 64 MiB VMEM per TC.
    tile_bytes = 2 * tb * (in_dim * x_bytes + H * out_bytes)
    inter_bytes = tb * h4p * 4
    fixed_bytes = 2 * ((k_dim * h4p + h4p * H) * w_bytes + (h4p + H) * 4)
    vmem_limit = int(min(max(4 * (tile_bytes + inter_bytes + fixed_bytes), 8 << 20),
                         32 << 20))

    out = pl.pallas_call(
        projection_head_kernel,
        out_shape=jax.ShapeDtypeStruct((B, H), out_dtype),
        grid_spec=pltpu.PrefetchScalarGridSpec(
            num_scalar_prefetch=0,
            grid=grid,
            in_specs=[
                pl.BlockSpec((tb, in_dim), lambda i: (i, 0)),   # x tile over batch (K=100 full dim)
                # Constant index_maps => weights/biases are DMA'd once and stay resident.
                pl.BlockSpec((k_dim, h4p), lambda i: (0, 0)),   # W1^T (100, 4H padded)
                pl.BlockSpec((1, h4p), lambda i: (0, 0)),       # b1
                pl.BlockSpec((h4p, H), lambda i: (0, 0)),       # W2^T (4H padded, H)
                pl.BlockSpec((1, H), lambda i: (0, 0)),         # b2
            ],
            out_specs=pl.BlockSpec((tb, H), lambda i: (i, 0)),  # unpadded (B, H) output
        ),
        compiler_params=pltpu.CompilerParams(
            dimension_semantics=("parallel",),
            vmem_limit_bytes=vmem_limit,
        ),
        cost_estimate=cost,
    )(x, params["w1_t"], params["b1"], params["w2_t"], params["b2"])

    return out


def projection_head(x, w1, b1, w2, b2, *, block_batch=None, dtype=None):
    """Convenience one-shot wrapper (PyTorch-layout params). Prefer preparing params
    once via prepare_projection_head_params + projection_head_apply in a real model."""
    params = prepare_projection_head_params(w1, b1, w2, b2, dtype=dtype)
    return projection_head_apply(x, params, block_batch=block_batch, out_dtype=x.dtype)


def projection_head_ref(x, w1, b1, w2, b2):
    h = jnp.maximum(x @ w1.T + b1, 0.0)
    return h @ w2.T + b2


if __name__ == "__main__":
    hidden_dim = 32
    batch = 8
    in_features = IN_FEATURES

    key = jax.random.PRNGKey(0)
    k_x, k_w1, k_b1, k_w2, k_b2, k_xl = jax.random.split(key, 6)

    # Deterministic synthetic parameters (same shapes as nn.Linear in __init__).
    x = jax.random.normal(k_x, (batch, in_features), dtype=jnp.float32)
    w1 = jax.random.normal(k_w1, (4 * hidden_dim, in_features), dtype=jnp.float32) * 0.05
    b1 = jax.random.normal(k_b1, (4 * hidden_dim,), dtype=jnp.float32) * 0.05
    w2 = jax.random.normal(k_w2, (hidden_dim, 4 * hidden_dim), dtype=jnp.float32) * 0.05
    b2 = jax.random.normal(k_b2, (hidden_dim,), dtype=jnp.float32) * 0.05

    ref = projection_head_ref(x, w1, b1, w2, b2)

    # 1) f32 path (exact-ish vs reference).
    params_f32 = prepare_projection_head_params(w1, b1, w2, b2)
    out = projection_head_apply(x, params_f32)
    out = jax.block_until_ready(out)
    assert out.shape == (batch, hidden_dim)
    assert jnp.allclose(out, ref, atol=1e-4, rtol=1e-4), "f32 mismatch vs reference"

    # 2) bf16 weights (v5e/v6e/v7x memory-bound path), f32 accumulate, f32 output.
    #    x stays f32 here and is quantized to bf16 inside the kernel (documented input
    #    quantization vs the f32 PyTorch reference -> looser tolerance).
    params_bf16 = prepare_projection_head_params(w1, b1, w2, b2, dtype=jnp.bfloat16)
    out_bf16 = projection_head_apply(x, params_bf16, out_dtype=jnp.float32)
    out_bf16 = jax.block_until_ready(out_bf16)
    assert out_bf16.shape == (batch, hidden_dim)
    assert jnp.allclose(out_bf16, ref, atol=3e-2, rtol=3e-2), "bf16 mismatch vs reference"

    # 3) Multi-tile batch with a ragged tail (grid > 1, masked tail-block store).
    x_large = jax.random.normal(k_xl, (1000, in_features), dtype=jnp.float32)
    out_large = projection_head_apply(x_large, params_f32, block_batch=256)
    out_large = jax.block_until_ready(out_large)
    ref_large = projection_head_ref(x_large, w1, b1, w2, b2)
    assert out_large.shape == (1000, hidden_dim)
    assert jnp.allclose(out_large, ref_large, atol=1e-4, rtol=1e-4), "ragged-tail mismatch"

    print("KERNEL_OK")
</pallas_src>

<mosaic_0001>
module attributes {stable_mosaic.version = 11 : i64} {
  func.func @projection_head_kernel(%arg0: i32, %arg1: memref<8x100xf32, #tpu.memory_space<vmem>>, %arg2: memref<100x128xf32, #tpu.memory_space<vmem>>, %arg3: memref<1x128xf32, #tpu.memory_space<vmem>>, %arg4: memref<128x32xf32, #tpu.memory_space<vmem>>, %arg5: memref<1x32xf32, #tpu.memory_space<vmem>>, %arg6: memref<8x32xf32, #tpu.memory_space<vmem>>) attributes {dimension_semantics = [#tpu.dimension_semantics<parallel>], iteration_bounds = array<i64: 1>, scalar_prefetch = 0 : i64, scratch_operands = 0 : i64, tpu.core_type = #tpu.core_type<tc>, window_params = [{transform_indices = @transform_0, window_bounds = array<i64: 8, 100>}, {pipeline_mode = #tpu.pipeline_mode<synchronous>, transform_indices = @transform_1, window_bounds = array<i64: 100, 128>}, {pipeline_mode = #tpu.pipeline_mode<synchronous>, transform_indices = @transform_2, window_bounds = array<i64: 1, 128>}, {pipeline_mode = #tpu.pipeline_mode<synchronous>, transform_indices = @transform_3, window_bounds = array<i64: 128, 32>}, {pipeline_mode = #tpu.pipeline_mode<synchronous>, transform_indices = @transform_4, window_bounds = array<i64: 1, 32>}, {transform_indices = @transform_5, window_bounds = array<i64: 8, 32>}]} {
    %c0 = arith.constant 0 : index
    %c0_0 = arith.constant 0 : index
    %0 = vector.load %arg1[%c0, %c0_0] : memref<8x100xf32, #tpu.memory_space<vmem>>, vector<8x100xf32>
    %c0_1 = arith.constant 0 : index
    %c0_2 = arith.constant 0 : index
    %1 = vector.load %arg2[%c0_1, %c0_2] : memref<100x128xf32, #tpu.memory_space<vmem>>, vector<100x128xf32>
    %cst = arith.constant dense<0.000000e+00> : vector<8x128xf32>
    %2 = tpu.matmul %0, %1, %cst {dimension_numbers = #tpu.dot_dimension_numbers<[1], [0], [0], [1], [0, 0, 1, 1], [], []>} : vector<8x100xf32>, vector<100x128xf32>, vector<8x128xf32> -> vector<8x128xf32>
    %c0_3 = arith.constant 0 : index
    %c0_4 = arith.constant 0 : index
    %3 = vector.load %arg3[%c0_3, %c0_4] : memref<1x128xf32, #tpu.memory_space<vmem>>, vector<1x128xf32>
    %4 = vector.broadcast %3 : vector<1x128xf32> to vector<8x128xf32>
    %5 = arith.addf %2, %4 : vector<8x128xf32>
    %cst_5 = arith.constant 0.000000e+00 : f32
    %6 = vector.broadcast %cst_5 : f32 to vector<8x128xf32>
    %7 = arith.maximumf %5, %6 : vector<8x128xf32>
    %c0_6 = arith.constant 0 : index
    %c0_7 = arith.constant 0 : index
    %8 = vector.load %arg4[%c0_6, %c0_7] : memref<128x32xf32, #tpu.memory_space<vmem>>, vector<128x32xf32>
    %cst_8 = arith.constant dense<0.000000e+00> : vector<8x32xf32>
    %9 = tpu.matmul %7, %8, %cst_8 {dimension_numbers = #tpu.dot_dimension_numbers<[1], [0], [0], [1], [0, 0, 1, 1], [], []>} : vector<8x128xf32>, vector<128x32xf32>, vector<8x32xf32> -> vector<8x32xf32>
    %c0_9 = arith.constant 0 : index
    %c0_10 = arith.constant 0 : index
    %10 = vector.load %arg5[%c0_9, %c0_10] : memref<1x32xf32, #tpu.memory_space<vmem>>, vector<1x32xf32>
    %11 = vector.broadcast %10 : vector<1x32xf32> to vector<8x32xf32>
    %12 = arith.addf %9, %11 : vector<8x32xf32>
    %c0_11 = arith.constant 0 : index
    %c0_12 = arith.constant 0 : index
    %13 = vector.load %arg6[%c0_11, %c0_12] : memref<8x32xf32, #tpu.memory_space<vmem>>, vector<8x32xf32>
    tpu.vector_store %arg6[%c0_11, %c0_12], %12 {strides = array<i32>} : memref<8x32xf32, #tpu.memory_space<vmem>>, vector<8x32xf32>,
    return
  }
  func.func @transform_0(%arg0: i32) -> (i32, i32) {
    %c0_i32 = arith.constant 0 : i32
    %c0_i32_0 = arith.constant 0 : i32
    return %arg0, %c0_i32 : i32, i32
  }
  func.func @transform_1(%arg0: i32) -> (i32, i32) {
    %c0_i32 = arith.constant 0 : i32
    %c0_i32_0 = arith.constant 0 : i32
    %c0_i32_1 = arith.constant 0 : i32
    return %c0_i32, %c0_i32_0 : i32, i32
  }
  func.func @transform_2(%arg0: i32) -> (i32, i32) {
    %c0_i32 = arith.constant 0 : i32
    %c0_i32_0 = arith.constant 0 : i32
    %c0_i32_1 = arith.constant 0 : i32
    return %c0_i32, %c0_i32_0 : i32, i32
  }
  func.func @transform_3(%arg0: i32) -> (i32, i32) {
    %c0_i32 = arith.constant 0 : i32
    %c0_i32_0 = arith.constant 0 : i32
    %c0_i32_1 = arith.constant 0 : i32
    return %c0_i32, %c0_i32_0 : i32, i32
  }
  func.func @transform_4(%arg0: i32) -> (i32, i32) {
    %c0_i32 = arith.constant 0 : i32
    %c0_i32_0 = arith.constant 0 : i32
    %c0_i32_1 = arith.constant 0 : i32
    return %c0_i32, %c0_i32_0 : i32, i32
  }
  func.func @transform_5(%arg0: i32) -> (i32, i32) {
    %c0_i32 = arith.constant 0 : i32
    %c0_i32_0 = arith.constant 0 : i32
    return %arg0, %c0_i32 : i32, i32
  }
}

</mosaic_0001>

<bundles_post_ra>
// kernel: tpu_custom_call.1
= control target key start
LH: loop header
LB: loop body
LE: loop exit
PB: predicated region body
PF: predicated region fallthrough
CT: control target
= control target key end

     0   :  { %vm43_vm0 = vcmask 1043456   ;;  %s287_s0 = inlined_call_operand.vmem [shape: f32[8,100], index: 0, kind: input, shape index: {}]   ;;  %s288_s1 = inlined_call_operand.vmem [shape: f32[100,128], index: 1, kind: input, shape index: {}]   ;;  %s289_s2 = inlined_call_operand.vmem [shape: f32[1,128], index: 2, kind: input, shape index: {}]   ;;  %s290_s3 = inlined_call_operand.vmem [shape: f32[128,32], index: 3, kind: input, shape index: {}]   ;;  %s291_s4 = inlined_call_operand.vmem [shape: f32[1,32], index: 4, kind: input, shape index: {}]   ;;  %s292_s5 = inlined_call_operand.hbm [shape: f32[8,32], index: 5, kind: output, shape index: {}]  }
   0x1   :  { %v34_v0 = vld [vmem:[%s288_s1 + $0x60] sm:$0xf]  ;;  %v33_v1 = vld [vmem:[%s288_s1 + $0x58] sm:$0xff]  ;;  %v32_v2 = vld [vmem:[%s288_s1 + $0x50] sm:$0xff] }
   0x2   :  { %126 = vmatpush.msk.msra.mxu0 %vm43_vm0, %v34_v0  ;;  %v31_v3 = vld [vmem:[%s288_s1 + $0x48] sm:$0xff]  ;;  %v83_v4 = vld [vmem:[%s290_s3 + $0x78] sm:$0xff]  ;;  %v82_v5 = vld [vmem:[%s290_s3 + $0x70] sm:$0xff] }
   0x3   :  { %88 = vmatpush.msra.mxu1 %v83_v4  ;;  %v30_v6 = vld [vmem:[%s288_s1 + $0x40] sm:$0xff]  ;;  %v81_v7 = vld [vmem:[%s290_s3 + $0x68] sm:$0xff]  ;;  %v29_v8 = vld [vmem:[%s288_s1 + $0x38] sm:$0xff] }
   0x4   :  { %51 = vmatpush.msra.mxu0 %v33_v1  ;;  %v80_v9 = vld [vmem:[%s290_s3 + $0x60] sm:$0xff]  ;;  %v28_v10 = vld [vmem:[%s288_s1 + $0x30] sm:$0xff]  ;;  %v79_v11 = vld [vmem:[%s290_s3 + $0x58] sm:$0xff] }
   0x5   :  { %89 = vmatpush.msra.mxu1 %v82_v5 }
   0x6   :  { %52 = vmatpush.msra.mxu0 %v32_v2 }
   0x7   :  { %90 = vmatpush.msra.mxu1 %v81_v7 }
   0x8   :  { %53 = vmatpush.msra.mxu0 %v31_v3 }
   0xa   :  { %54 = vmatpush.msra.mxu0 %v30_v6 }
   0xb   :  { %10 = vsyncpa [#allocation3], 0  ;;  %91 = vmatpush.msra.mxu1 %v80_v9  ;;  %v27_v12 = vld [vmem:[%s288_s1 + $0x28] sm:$0xff]  ;;  %v78_v13 = vld [vmem:[%s290_s3 + $0x50] sm:$0xff]  ;;  %vm39_vm1 = vcmask 818176   ;;  %s157_s30 = smov [#allocation2]  }
   0xc   :  { %55 = vmatpush.msra.mxu0 %v29_v8  ;;  %v26_v14 = vld [vmem:[%s288_s1 + $0x20] sm:$0xff]  ;;  %v77_v15 = vld [vmem:[%s290_s3 + $0x48] sm:$0xff]  ;;  %v25_v16 = vld [vmem:[%s288_s1 + $0x18] sm:$0xff]  ;;  %s115_s6 = sshll.u32 %s157_s30, 4  ;;  %s117_s9 = sshll.u32 %s292_s5, 4  ;;  %vm108_vm2 = vcmask 261120   ;;  %s116_s6 = int_to_ptr.vmem [resolvable:$true] %s115_s6  ;;  %s118_s9 = int_to_ptr.hbm [resolvable:$true] %s117_s9 }
   0xd   :  { %92 = vmatpush.msra.mxu1 %v79_v11  ;;  %v76_v17 = vld [vmem:[%s290_s3 + $0x40] sm:$0xff]  ;;  %v24_v18 = vld [vmem:[%s288_s1 + $0x10] sm:$0xff]  ;;  %v75_v19 = vld [vmem:[%s290_s3 + $0x38] sm:$0xff] }
   0xe   :  { %56 = vmatpush.msra.mxu0 %v28_v10  ;;  %v23_v20 = vld [vmem:[%s288_s1 + $0x8] sm:$0xff]  ;;  %v74_v21 = vld [vmem:[%s290_s3 + $0x30] sm:$0xff]  ;;  %v22_v22 = vld [vmem:[%s288_s1] sm:$0xff] }
   0xf   :  { %93 = vmatpush.msra.mxu1 %v78_v13  ;;  %v73_v23 = vld [vmem:[%s290_s3 + $0x28] sm:$0xff]  ;;  %v21_v24 = vld [vmem:[%s287_s0] sm:$0xff]  ;;  %v71_v26 = vld [vmem:[%s290_s3 + $0x18] sm:$0xff] }
  0x10   :  { %57 = vmatpush.msra.mxu0 %v27_v12  ;;  %v72_v25 = vld [vmem:[%s290_s3 + $0x20] sm:$0xff]  ;;  %v70_v27 = vld [vmem:[%s290_s3 + $0x10] sm:$0xff]  ;;  %v69_v28 = vld [vmem:[%s290_s3 + $0x8] sm:$0xff] }
  0x11   :  { %94 = vmatpush.msra.mxu1 %v77_v15  ;;  %v68_v29 = vld [vmem:[%s290_s3] sm:$0xff] }
  0x12   :  { %58 = vmatpush.msra.mxu0 %v26_v14  ;;  %v129_v30 = vld [vmem:[%s289_s2] ss:$0 sm:$0xff] }
  0x13   :  { %95 = vmatpush.msra.mxu1 %v76_v17  ;;  %v130_v34 = vld [vmem:[%s291_s4] ss:$0 sm:$0xff] }
  0x14   :  { %59 = vmatpush.msra.mxu0 %v25_v16 }
  0x15   :  { %96 = vmatpush.msra.mxu1 %v75_v19 }
  0x16   :  { %60 = vmatpush.msra.mxu0 %v24_v18 }
  0x17   :  { %97 = vmatpush.msra.mxu1 %v74_v21 }
  0x18   :  { %61 = vmatpush.msra.mxu0 %v23_v20 }
  0x19   :  { %98 = vmatpush.msra.mxu1 %v73_v23 }
  0x1a   :  { %62 = vmatpush.msra.mxu0 %v22_v22 }
  0x1b   :  { %127 = vmatmul.msk.f32.vlgmr.msra.gmra.mxu0 %vm39_vm1, %v21_v24  ;;  %99 = vmatpush.msra.mxu1 %v72_v25 }
  0x1d   :  { %100 = vmatpush.msra.mxu1 %v71_v26 }
  0x1f   :  { %101 = vmatpush.msra.mxu1 %v70_v27 }
  0x21   :  { %102 = vmatpush.msra.mxu1 %v69_v28 }
  0x23   :  { %103 = vmatpush.msra.mxu1 %v68_v29 }
  0x98   :  { %v64_v31 = vpop.f32.mrf.mxu0 }
  0x99   :  { %v65_v32 = vadd.f32 %v129_v30, %v64_v31 }
  0x9b   :  { %v67_v33 = vmax.f32 %v65_v32, 0.0 }
  0x9d   :  { %104 = vmatmul.f32.vlgmr.msra.gmra.mxu1 %v67_v33 }
 0x11a   :  { %v105_v35 = vpop.f32.mrf.mxu1 }
 0x11b   :  { %v106_v36 = vadd.f32 %v130_v34, %v105_v35 }
 0x11d   :  { %109 = vst.msk [vmem:[#allocation2] sm:$0xff] %vm108_vm2, %v106_v36 }
 0x11e   :  { %120 = dma.vmem_to_hbm [thread:$0]  %s116_s6, 128, %s118_s9, [#allocation3]  }
 0x11f   :  { %155 = dma.done.wait [#allocation3], 128  }
 0x120   :  { %156 = vsyncadd [#allocation3], 4294967168 }
 0x121   :  { %125 = vsyncpa [#allocation3], 1 }

</bundles_post_ra>
